<compile_context>
chip_gen: v7x
topology: tpu7x:2x2x1
jax: 0.10.0
libtpu: 0.0.40
codegen_flags: <defaults>
</compile_context>

<pallas_src>
import math
import numpy as np
import jax
import jax.numpy as jnp
from jax.experimental import pallas as pl
from jax.experimental.pallas import tpu as pltpu


def _round_up(x, m):
    return ((x + m - 1) // m) * m


def _leaky_relu(x, slope=0.01):
    return jnp.where(x >= 0, x, slope * x)


# ----------------------------------------------------------------------------
# Fused Pallas kernel (whole forward hot path, single invocation)
# ----------------------------------------------------------------------------
def _fused_gcn_attention_kernel(x_ref, w_in_ref, w_g1_ref, w_g2_ref, b_g_ref,
                                sel_ref, w_sa_ref, b_sa_ref, w_tn_ref, mask_ref,
                                att_ref, a2_ref):
    # --- input_conversion + LeakyReLU ------------------------------- (Mp, H)
    x2 = _leaky_relu(jnp.dot(x_ref[...], w_in_ref[...],
                             preferred_element_type=jnp.float32))

    # --- global embedding: column sum via MXU ones-trick ------------- (1, H)
    # 1/M mean scale is pre-folded into w_g2 by the wrapper; padded rows of X
    # are zero -> zero x2 rows -> they do not perturb the sum.
    ones_row = jnp.ones((1, x2.shape[0]), dtype=jnp.float32)
    gsum = jnp.dot(ones_row, x2, preferred_element_type=jnp.float32)

    # --- globalconversion(cat(x2, globalemb)) ------------------------ (Mp, H)
    x1 = (jnp.dot(x2, w_g1_ref[...], preferred_element_type=jnp.float32)
          + jnp.dot(gsum, w_g2_ref[...], preferred_element_type=jnp.float32)
          + b_g_ref[...])

    # --- row selection (postman/location/current-node gather) -------- (Rp, H)
    # one-hot (Rp, Mp) @ x1 (Mp, H) on the MXU; x1 stays VMEM-resident.
    xsel = jnp.dot(sel_ref[...], x1, preferred_element_type=jnp.float32)

    # --- selfass + LeakyReLU + to_num --------------------------------
    h = _leaky_relu(jnp.dot(xsel, w_sa_ref[...],
                            preferred_element_type=jnp.float32) + b_sa_ref[...])
    # lane-major logits: (1, H) x (Rp, H), contracting H  ->  (1, Rp)
    a2 = jax.lax.dot_general(w_tn_ref[...], h, (((1,), (1,)), ((), ())),
                             preferred_element_type=jnp.float32)

    # --- attention3 = 10*tanh, masked softmax over the valid lanes ---
    a3 = 10.0 * jnp.tanh(a2) + mask_ref[...]          # mask: 0 valid / -1e30 pad
    m = jnp.max(a3, axis=-1, keepdims=True)
    e = jnp.exp(a3 - m)                               # padded lanes underflow to 0
    denom = jnp.sum(e, axis=-1, keepdims=True)
    att_ref[...] = e / denom                          # exact divide (tiny row)
    a2_ref[...] = a2


def fused_gcn_attention_pallas(Xp, W_in_T, W_g1, W_g2s, b_g, sel, W_sa_T, b_sa,
                               W_tn, mask):
    Rp = sel.shape[0]
    vmem = lambda: pl.BlockSpec(memory_space=pltpu.MemorySpace.VMEM)
    return pl.pallas_call(
        _fused_gcn_attention_kernel,
        out_shape=(jax.ShapeDtypeStruct((1, Rp), jnp.float32),   # attention (softmax)
                   jax.ShapeDtypeStruct((1, Rp), jnp.float32)),  # attention2 (logits)
        in_specs=[vmem() for _ in range(10)],
        out_specs=(vmem(), vmem()),
    )(Xp, W_in_T, W_g1, W_g2s, b_g, sel, W_sa_T, b_sa, W_tn, mask)


# ----------------------------------------------------------------------------
# Deterministic parameter init (PyTorch-default style)
# ----------------------------------------------------------------------------
def linear_params(key, fan_in, fan_out, bias=True):
    kw, kb = jax.random.split(key)
    bound = 1.0 / math.sqrt(fan_in)
    W = jax.random.uniform(kw, (fan_out, fan_in), minval=-bound, maxval=bound,
                           dtype=jnp.float32)
    b = None
    if bias:
        b = jax.random.uniform(kb, (fan_out,), minval=-bound, maxval=bound,
                               dtype=jnp.float32)
    return W, b


# ----------------------------------------------------------------------------
# Forward (neural hot path of ResidualGatedGCNModel.forward)
# ----------------------------------------------------------------------------
def residual_gated_gcn_forward(params, X, postman_indices, locationindices, currentnode,
                               PN_total, NN_total, hidden_dim):
    """X: (PN_total*NN_total, D_in) = cat(x1_np, postman_node_emb) flattened."""
    H = hidden_dim
    M, D = X.shape                       # M = PN*NN (52), D = D_in (30)

    # ---- layout prep (zero numerical effect) ----
    Dp = _round_up(D, 8)                 # 30 -> 32 : sublane-aligned K for W_in
    Mp = _round_up(M, 8)                 # 52 -> 56 : sublane-aligned rows
    Xp = jnp.zeros((Mp, Dp), jnp.float32).at[:M, :D].set(X)
    W_in_T = jnp.zeros((Dp, H), jnp.float32).at[:D, :].set(
        params["input_conversion_W"].T)
    W_g = params["globalconversion_W"]               # (H, 2H)
    W_g1 = W_g[:, :H].T                              # (H, H) multiplies x2
    W_g2_scaled = W_g[:, H:].T * (1.0 / M)           # (H, H) mean 1/M folded in
    b_g = params["globalconversion_b"].reshape(1, H)
    W_sa_T = params["selfass_W"].T                   # (H, H)
    b_sa = params["selfass_b"].reshape(1, H)
    W_tn = params["to_num_W"].reshape(1, H)          # row vector (trans-B contraction)

    # ---- flat row-selection indices (same semantics as the torch fancy-indexing
    #      + eyevalues trick): for each unassigned postman p: all required
    #      locations, then its current node. ----
    p_idx = [int(p) for p in postman_indices]
    l_idx = [int(l) for l in locationindices]
    c_idx = [int(c) for c in currentnode]
    rows = []
    for pi, p in enumerate(p_idx):
        rows.extend(p * NN_total + l for l in l_idx)
        rows.append(p * NN_total + c_idx[pi])
    R = len(rows)                                    # PN_un * (NN_un + 1)
    Rp = _round_up(max(R, 1), 128)                   # lane-dense output width

    sel_np = np.zeros((Rp, Mp), dtype=np.float32)    # one-hot gather matrix
    sel_np[np.arange(R), np.asarray(rows, dtype=np.int64)] = 1.0
    mask_np = np.full((1, Rp), -1e30, dtype=np.float32)
    mask_np[0, :R] = 0.0

    att_row, a2_row = fused_gcn_attention_pallas(
        Xp, W_in_T, W_g1, W_g2_scaled, b_g,
        jnp.asarray(sel_np), W_sa_T, b_sa, W_tn, jnp.asarray(mask_np))

    PN_un = len(p_idx)
    NNp1 = len(l_idx) + 1
    attention = att_row[:, :R]                             # (1, R)
    attention2 = a2_row[0, :R].reshape(PN_un, NNp1, 1)
    # additional_penalty = sum(max(|attention2| - 2.5, 0))
    additional_penalty = jnp.sum(jnp.maximum(jnp.abs(attention2) - 2.5, 0.0))

    # TODO(synk): selector() Categorical sampling (host RNG exploration), ban-selection
    #             masking (host np.random), OD greedy argmin over g.find_distance, and the
    #             recursive re-assignment loop are host-side data-dependent control flow
    #             and are not kernelizable; only the attention/softmax compute is returned.
    return attention, attention2, additional_penalty


# ----------------------------------------------------------------------------
# Pure-JAX reference (for correctness check)
# ----------------------------------------------------------------------------
def reference_forward(params, X, postman_indices, locationindices, currentnode,
                      PN_total, NN_total, hidden_dim):
    H = hidden_dim
    lrelu = lambda x: jnp.where(x >= 0, x, 0.01 * x)
    x2 = lrelu(X @ params["input_conversion_W"].T)
    g = jnp.mean(x2, axis=0, keepdims=True)
    globalemb = jnp.broadcast_to(g, x2.shape)
    x1 = jnp.concatenate([x2, globalemb], axis=-1) @ params["globalconversion_W"].T \
        + params["globalconversion_b"]
    x1_3d = x1.reshape(PN_total, NN_total, H)
    p_idx = jnp.asarray(postman_indices); l_idx = jnp.asarray(locationindices)
    c_idx = jnp.asarray(currentnode)
    sel = jnp.concatenate([x1_3d[p_idx][:, l_idx], x1_3d[p_idx, c_idx][:, None, :]], axis=1)
    h = lrelu(sel @ params["selfass_W"].T + params["selfass_b"])
    a2 = h @ params["to_num_W"].T
    a3 = 10.0 * jnp.tanh(a2).reshape(1, -1)
    att = jax.nn.softmax(a3, axis=-1)
    return att, a2


# ----------------------------------------------------------------------------
# Main
# ----------------------------------------------------------------------------
if __name__ == "__main__":
    # Small shapes consistent with the module's dimensional bookkeeping.
    PN_total = 4          # number of postmen (PN)
    NN_total = 13         # number of nodes; NN_lower == NN_total
    node_dim = 8
    postman_dim = 8
    hidden_dim = 32
    speed = 4.0
    NN_lower = NN_total
    D_in = node_dim + postman_dim + 2 + NN_lower - 1          # input_conversion in_features = 30
    feat_dim = D_in - 9                                       # x1_np feature dim = 21

    key = jax.random.PRNGKey(0)
    ks = jax.random.split(key, 10)

    # Parameters (only those used on the forward hot path).
    embedding = jax.random.normal(ks[0], (PN_total, 3), dtype=jnp.float32)     # nn.Embedding(PN, 3)
    W_ic, _ = linear_params(ks[1], D_in, hidden_dim, bias=False)               # input_conversion
    W_gc, b_gc = linear_params(ks[2], 2 * hidden_dim, hidden_dim, bias=True)   # globalconversion
    W_sa, b_sa = linear_params(ks[3], hidden_dim, hidden_dim, bias=True)       # selfass
    W_tn, _ = linear_params(ks[4], hidden_dim, 1, bias=False)                  # to_num
    params = dict(input_conversion_W=W_ic, globalconversion_W=W_gc, globalconversion_b=b_gc,
                  selfass_W=W_sa, selfass_b=b_sa, to_num_W=W_tn)

    # ---- Synthetic problem state (replaces env objects g / state / nodepostman) ----
    if_postman_unassigned = [1, 1, 0, 1]
    if_assignment_required = [0, 0, 1, 0, 0, 1, 0, 1, 0, 1, 0, 1, 0]
    initialnode = [0, 3, 6, 8]                                   # postman_prev_node
    postman_indices = [i for i in range(PN_total) if if_postman_unassigned[i]]
    locationindices = [i for i, j in enumerate(if_assignment_required) if j]
    currentnode = [initialnode[i] for i in range(PN_total) if if_postman_unassigned[i]]

    postman_np = np.array(jax.random.uniform(ks[5], (1, PN_total, postman_dim)), dtype=np.float32)
    postman_np[0, :, 4] = np.array([0.0, 0.0, 1.0, 0.0], dtype=np.float32)     # working flag
    x_nodes_np = np.array(jax.random.uniform(ks[6], (1, NN_total, node_dim)), dtype=np.float32)
    dist_node = np.array(jax.random.uniform(ks[7], (NN_total, NN_total), maxval=5.0), dtype=np.float32)
    dist_dest = np.array(jax.random.uniform(ks[8], (PN_total, NN_total), maxval=5.0), dtype=np.float32)
    nearest3 = np.array(jax.random.uniform(ks[9], (NN_total, 3)), dtype=np.float32)

    # ---- postman/node embedding glue (mirrors x_emb / embindex construction) ----
    E = np.array(embedding)
    x_emb = np.zeros((1, NN_total, 2), dtype=np.int64)
    alreadylisted, embindex1, embindex2 = [], [], []
    # nodepostman is all-empty here; only the unassigned-postman loop contributes.
    for i in range(PN_total):
        if if_postman_unassigned[i]:
            n = int(initialnode[i])
            if n in alreadylisted:
                x_emb[0, n, 1] = i
                embindex2.append(n)
            else:
                x_emb[0, n, 0] = i
                alreadylisted.append(n)
                embindex1.append(n)
    node_emb1 = np.zeros((1, NN_total, 3), dtype=np.float32)
    node_emb2 = np.zeros((1, NN_total, 3), dtype=np.float32)
    if embindex1:
        node_emb1[0, np.sort(embindex1)] = E[x_emb[0, np.sort(embindex1), 0]]
    if embindex2:
        node_emb2[0, np.sort(embindex2)] = E[x_emb[0, np.sort(embindex2), 1]]
    node_emb_all = np.concatenate([node_emb1, node_emb2], axis=2)               # (1, NN, 6)
    node_emb_all = np.repeat(node_emb_all[:, None], PN_total, axis=1)           # (1, PN, NN, 6)
    p_emb = np.repeat(E[np.arange(PN_total)][None, :, None, :], NN_total, axis=2)  # (1, PN, NN, 3)
    postman_node_emb = np.concatenate([p_emb, node_emb_all], axis=-1)[0]        # (PN, NN, 9)

    # ---- x1_np feature construction (distance / property / nearest3) ----
    x1_np = np.zeros((PN_total, NN_total, feat_dim), dtype=np.float32)
    for p in range(PN_total):
        for l in range(NN_total):
            if initialnode[p] == l and p in postman_indices:
                prop = np.array([0.0], dtype=np.float32)
            elif l in locationindices and p in postman_indices:
                prop = np.array([1.0], dtype=np.float32)
            else:
                prop = np.array([0.5], dtype=np.float32)
            if postman_np[0, p, 4] == 1:
                distance = np.array([(float(postman_np[0, p, 6]) * 10 + 3
                                      + dist_dest[p, l] / speed) / 10], dtype=np.float32)
            else:
                distance = np.array([dist_node[initialnode[p], l] / speed / 10], dtype=np.float32)
            x1_np[p, l] = np.concatenate((postman_np[0, p], x_nodes_np[0, l],
                                          distance, prop, nearest3[l]))

    # cat(x1_np, postman_node_emb) -> (PN*NN, D_in)
    X = jnp.asarray(np.concatenate([x1_np, postman_node_emb], axis=-1)
                    .reshape(PN_total * NN_total, D_in), dtype=jnp.float32)

    # ---- run fused Pallas kernel ----
    attention, attention2, add_pen = residual_gated_gcn_forward(
        params, X, postman_indices, locationindices, currentnode,
        PN_total, NN_total, hidden_dim)
    jax.block_until_ready((attention, attention2, add_pen))

    # correctness check against pure-JAX reference
    att_ref, a2_ref = reference_forward(
        params, X, postman_indices, locationindices, currentnode,
        PN_total, NN_total, hidden_dim)
    np.testing.assert_allclose(np.asarray(attention), np.asarray(att_ref),
                               rtol=2e-3, atol=1e-5)
    np.testing.assert_allclose(np.asarray(attention2).reshape(-1, 1),
                               np.asarray(a2_ref).reshape(-1, 1), rtol=1e-3, atol=1e-4)

    print("KERNEL_OK")
</pallas_src>

<mosaic_0001>
module attributes {stable_mosaic.version = 11 : i64} {
  func.func @_fused_gcn_attention_kernel(%arg0: memref<56x32xf32, #tpu.memory_space<vmem>>, %arg1: memref<32x32xf32, #tpu.memory_space<vmem>>, %arg2: memref<32x32xf32, #tpu.memory_space<vmem>>, %arg3: memref<32x32xf32, #tpu.memory_space<vmem>>, %arg4: memref<1x32xf32, #tpu.memory_space<vmem>>, %arg5: memref<128x56xf32, #tpu.memory_space<vmem>>, %arg6: memref<32x32xf32, #tpu.memory_space<vmem>>, %arg7: memref<1x32xf32, #tpu.memory_space<vmem>>, %arg8: memref<1x32xf32, #tpu.memory_space<vmem>>, %arg9: memref<1x128xf32, #tpu.memory_space<vmem>>, %arg10: memref<1x128xf32, #tpu.memory_space<vmem>>, %arg11: memref<1x128xf32, #tpu.memory_space<vmem>>) attributes {dimension_semantics = [], scalar_prefetch = 0 : i64, scratch_operands = 0 : i64, tpu.core_type = #tpu.core_type<tc>} {
    %c0 = arith.constant 0 : index
    %c0_0 = arith.constant 0 : index
    %0 = vector.load %arg0[%c0, %c0_0] : memref<56x32xf32, #tpu.memory_space<vmem>>, vector<56x32xf32>
    %c0_1 = arith.constant 0 : index
    %c0_2 = arith.constant 0 : index
    %1 = vector.load %arg1[%c0_1, %c0_2] : memref<32x32xf32, #tpu.memory_space<vmem>>, vector<32x32xf32>
    %cst = arith.constant dense<0.000000e+00> : vector<56x32xf32>
    %2 = tpu.matmul %0, %1, %cst {dimension_numbers = #tpu.dot_dimension_numbers<[1], [0], [0], [1], [0, 0, 1, 1], [], []>} : vector<56x32xf32>, vector<32x32xf32>, vector<56x32xf32> -> vector<56x32xf32>
    %cst_3 = arith.constant 0.000000e+00 : f32
    %3 = vector.broadcast %cst_3 : f32 to vector<56x32xf32>
    %4 = arith.cmpf oge, %2, %3 : vector<56x32xf32>
    %cst_4 = arith.constant 0.00999999977 : f32
    %5 = vector.broadcast %cst_4 : f32 to vector<56x32xf32>
    %6 = arith.mulf %5, %2 : vector<56x32xf32>
    %7 = arith.select %4, %2, %6 : vector<56x32xi1>, vector<56x32xf32>
    %cst_5 = arith.constant 1.000000e+00 : f32
    %8 = vector.broadcast %cst_5 : f32 to vector<1x56xf32>
    %cst_6 = arith.constant dense<0.000000e+00> : vector<1x32xf32>
    %9 = tpu.matmul %8, %7, %cst_6 {dimension_numbers = #tpu.dot_dimension_numbers<[1], [0], [0], [1], [0, 0, 1, 1], [], []>} : vector<1x56xf32>, vector<56x32xf32>, vector<1x32xf32> -> vector<1x32xf32>
    %c0_7 = arith.constant 0 : index
    %c0_8 = arith.constant 0 : index
    %10 = vector.load %arg2[%c0_7, %c0_8] : memref<32x32xf32, #tpu.memory_space<vmem>>, vector<32x32xf32>
    %cst_9 = arith.constant dense<0.000000e+00> : vector<56x32xf32>
    %11 = tpu.matmul %7, %10, %cst_9 {dimension_numbers = #tpu.dot_dimension_numbers<[1], [0], [0], [1], [0, 0, 1, 1], [], []>} : vector<56x32xf32>, vector<32x32xf32>, vector<56x32xf32> -> vector<56x32xf32>
    %c0_10 = arith.constant 0 : index
    %c0_11 = arith.constant 0 : index
    %12 = vector.load %arg3[%c0_10, %c0_11] : memref<32x32xf32, #tpu.memory_space<vmem>>, vector<32x32xf32>
    %cst_12 = arith.constant dense<0.000000e+00> : vector<1x32xf32>
    %13 = tpu.matmul %9, %12, %cst_12 {dimension_numbers = #tpu.dot_dimension_numbers<[1], [0], [0], [1], [0, 0, 1, 1], [], []>} : vector<1x32xf32>, vector<32x32xf32>, vector<1x32xf32> -> vector<1x32xf32>
    %14 = vector.broadcast %13 : vector<1x32xf32> to vector<56x32xf32>
    %15 = arith.addf %11, %14 : vector<56x32xf32>
    %c0_13 = arith.constant 0 : index
    %c0_14 = arith.constant 0 : index
    %16 = vector.load %arg4[%c0_13, %c0_14] : memref<1x32xf32, #tpu.memory_space<vmem>>, vector<1x32xf32>
    %17 = vector.broadcast %16 : vector<1x32xf32> to vector<56x32xf32>
    %18 = arith.addf %15, %17 : vector<56x32xf32>
    %c0_15 = arith.constant 0 : index
    %c0_16 = arith.constant 0 : index
    %19 = vector.load %arg5[%c0_15, %c0_16] : memref<128x56xf32, #tpu.memory_space<vmem>>, vector<128x56xf32>
    %cst_17 = arith.constant dense<0.000000e+00> : vector<128x32xf32>
    %20 = tpu.matmul %19, %18, %cst_17 {dimension_numbers = #tpu.dot_dimension_numbers<[1], [0], [0], [1], [0, 0, 1, 1], [], []>} : vector<128x56xf32>, vector<56x32xf32>, vector<128x32xf32> -> vector<128x32xf32>
    %c0_18 = arith.constant 0 : index
    %c0_19 = arith.constant 0 : index
    %21 = vector.load %arg6[%c0_18, %c0_19] : memref<32x32xf32, #tpu.memory_space<vmem>>, vector<32x32xf32>
    %cst_20 = arith.constant dense<0.000000e+00> : vector<128x32xf32>
    %22 = tpu.matmul %20, %21, %cst_20 {dimension_numbers = #tpu.dot_dimension_numbers<[1], [0], [0], [1], [0, 0, 1, 1], [], []>} : vector<128x32xf32>, vector<32x32xf32>, vector<128x32xf32> -> vector<128x32xf32>
    %c0_21 = arith.constant 0 : index
    %c0_22 = arith.constant 0 : index
    %23 = vector.load %arg7[%c0_21, %c0_22] : memref<1x32xf32, #tpu.memory_space<vmem>>, vector<1x32xf32>
    %24 = vector.broadcast %23 : vector<1x32xf32> to vector<128x32xf32>
    %25 = arith.addf %22, %24 : vector<128x32xf32>
    %cst_23 = arith.constant 0.000000e+00 : f32
    %26 = vector.broadcast %cst_23 : f32 to vector<128x32xf32>
    %27 = arith.cmpf oge, %25, %26 : vector<128x32xf32>
    %cst_24 = arith.constant 0.00999999977 : f32
    %28 = vector.broadcast %cst_24 : f32 to vector<128x32xf32>
    %29 = arith.mulf %28, %25 : vector<128x32xf32>
    %30 = arith.select %27, %25, %29 : vector<128x32xi1>, vector<128x32xf32>
    %c0_25 = arith.constant 0 : index
    %c0_26 = arith.constant 0 : index
    %31 = vector.load %arg8[%c0_25, %c0_26] : memref<1x32xf32, #tpu.memory_space<vmem>>, vector<1x32xf32>
    %cst_27 = arith.constant dense<0.000000e+00> : vector<1x128xf32>
    %32 = tpu.matmul %31, %30, %cst_27 {dimension_numbers = #tpu.dot_dimension_numbers<[1], [1], [0], [0], [0, 0, 1, 0], [], []>} : vector<1x32xf32>, vector<128x32xf32>, vector<1x128xf32> -> vector<1x128xf32>
    %33 = math.tanh %32 : vector<1x128xf32>
    %cst_28 = arith.constant 1.000000e+01 : f32
    %34 = vector.broadcast %cst_28 : f32 to vector<1x128xf32>
    %35 = arith.mulf %34, %33 : vector<1x128xf32>
    %c0_29 = arith.constant 0 : index
    %c0_30 = arith.constant 0 : index
    %36 = vector.load %arg9[%c0_29, %c0_30] : memref<1x128xf32, #tpu.memory_space<vmem>>, vector<1x128xf32>
    %37 = arith.addf %35, %36 : vector<1x128xf32>
    %cst_31 = arith.constant dense<0xFF800000> : vector<1xf32>
    %38 = vector.multi_reduction <maximumf>, %37, %cst_31 [1] : vector<1x128xf32> to vector<1xf32>
    %39 = vector.shape_cast %38 : vector<1xf32> to vector<1x1xf32>
    %40 = vector.broadcast %39 : vector<1x1xf32> to vector<1x128xf32>
    %41 = arith.subf %37, %40 : vector<1x128xf32>
    %42 = math.exp %41 : vector<1x128xf32>
    %cst_32 = arith.constant dense<0.000000e+00> : vector<1xf32>
    %43 = vector.multi_reduction <add>, %42, %cst_32 [1] : vector<1x128xf32> to vector<1xf32>
    %44 = vector.shape_cast %43 : vector<1xf32> to vector<1x1xf32>
    %45 = vector.broadcast %44 : vector<1x1xf32> to vector<1x128xf32>
    %46 = arith.divf %42, %45 : vector<1x128xf32>
    %c0_33 = arith.constant 0 : index
    %c0_34 = arith.constant 0 : index
    %47 = vector.load %arg10[%c0_33, %c0_34] : memref<1x128xf32, #tpu.memory_space<vmem>>, vector<1x128xf32>
    tpu.vector_store %arg10[%c0_33, %c0_34], %46 {strides = array<i32>} : memref<1x128xf32, #tpu.memory_space<vmem>>, vector<1x128xf32>,
    %c0_35 = arith.constant 0 : index
    %c0_36 = arith.constant 0 : index
    %48 = vector.load %arg11[%c0_35, %c0_36] : memref<1x128xf32, #tpu.memory_space<vmem>>, vector<1x128xf32>
    tpu.vector_store %arg11[%c0_35, %c0_36], %32 {strides = array<i32>} : memref<1x128xf32, #tpu.memory_space<vmem>>, vector<1x128xf32>,
    return
  }
}

</mosaic_0001>

<bundles_post_ra>
// kernel: tpu_custom_call.1
= control target key start
LH: loop header
LB: loop body
LE: loop exit
PB: predicated region body
PF: predicated region fallthrough
CT: control target
= control target key end

     0   :  { %17 = vsyncpa [#allocation3], 0  ;;  %v1612_v3 = vmov 0.0|0.0   ;;  %vm1613_vm0 = vmmov 0   ;;  %v1614_v6 = vmov 0.0   ;;  %s1974_s0 = inlined_call_operand.vmem [shape: f32[56,32], index: 0, kind: input, shape index: {}]   ;;  %s1975_s1 = inlined_call_operand.vmem [shape: f32[32,32], index: 1, kind: input, shape index: {}]   ;;  %s1976_s2 = inlined_call_operand.vmem [shape: f32[32,32], index: 2, kind: input, shape index: {}]   ;;  %s1977_s3 = inlined_call_operand.vmem [shape: f32[32,32], index: 3, kind: input, shape index: {}]   ;;  %s1978_s4 = inlined_call_operand.vmem [shape: f32[1,32], index: 4, kind: input, shape index: {}]   ;;  %s1979_s5 = inlined_call_operand.vmem [shape: f32[128,56], index: 5, kind: input, shape index: {}]   ;;  %s1980_s6 = inlined_call_operand.vmem [shape: f32[32,32], index: 6, kind: input, shape index: {}]   ;;  %s1981_s7 = inlined_call_operand.vmem [shape: f32[1,32], index: 7, kind: input, shape index: {}]   ;;  %s1982_s8 = inlined_call_operand.vmem [shape: f32[1,32], index: 8, kind: input, shape index: {}]   ;;  %s1983_s9 = inlined_call_operand.vmem [shape: f32[1,128], index: 9, kind: input, shape index: {}]   ;;  %s1984_s10 = inlined_call_operand.hbm [shape: f32[1,128], index: 10, kind: output, shape index: {0}]   ;;  %s1985_s11 = inlined_call_operand.hbm [shape: f32[1,128], index: 11, kind: output, shape index: {1}]  }
   0x1   :  { %v46_v0 = vld [vmem:[%s1975_s1] sm:$0xff]  ;;  %v47_v1 = vld [vmem:[%s1975_s1 + $0x8] sm:$0xff]  ;;  %v48_v2 = vld [vmem:[%s1975_s1 + $0x10] sm:$0xff]  ;;  %1469 = vmatprep.subr.bf16.mxu0 %v1612_v3  ;;  %1548 = vmatprep.subr.bf16.mxu1 %v1612_v3 }
   0x2   :  { %v1470_v4 = vpack.c.bf16 %v47_v1, %v46_v0  ;;  %v49_v5 = vld [vmem:[%s1975_s1 + $0x18] sm:$0xff]  ;;  %1286 = vmatprep.mubr.msk.f32.mxu0 %vm1613_vm0, %v1614_v6  ;;  %1298 = vmatprep.mubr.msk.f32.mxu1 %vm1613_vm0, %v1614_v6 }
   0x3   :  { %v1473_v7 = vpack.c.bf16 %v49_v5, %v48_v2 }
   0x4   :  { %1471 = vmatpush3.bf16.msra.mxu0 %v1470_v4  ;;  %1550 = vmatpush3.bf16.msra.mxu1 %v1470_v4 }
   0x5   :  { %18 = vsyncpa [#allocation5], 0  ;;  %1472 = vmatprep.subr.bf16.mxu0 %v1612_v3  ;;  %1549 = vmatprep.subr.bf16.mxu1 %v1612_v3  ;;  %v39_v8 = vld [vmem:[%s1974_s0] sm:$0xff]  ;;  %vm50_vm1 = vcmask 261120   ;;  %v40_v10 = vld [vmem:[%s1974_s0 + $0x8] sm:$0xff]  ;;  %vm193_vm9 = vcmask 457728   ;;  %v348_v5 = vlaneseq }
   0x6   :  { %v43_v9 = vld [vmem:[%s1974_s0 + $0x20] sm:$0xff]  ;;  %v44_v11 = vld [vmem:[%s1974_s0 + $0x28] sm:$0xff]  ;;  %v41_v12 = vld [vmem:[%s1974_s0 + $0x10] sm:$0xff]  ;;  %v1615_v51 = vmov 1.0  }
   0x7   :  { %v45_v13 = vld [vmem:[%s1974_s0 + $0x30] sm:$0xff]  ;;  %v42_v14 = vld [vmem:[%s1974_s0 + $0x18] sm:$0xff]  ;;  %v271_v45 = vld [vmem:[%s1977_s3] sm:$0xff] }
   0x8   :  { %1474 = vmatpush3.bf16.msra.mxu0 %v1473_v7  ;;  %1551 = vmatpush3.bf16.msra.mxu1 %v1473_v7  ;;  %v272_v46 = vld [vmem:[%s1977_s3 + $0x8] sm:$0xff]  ;;  %v273_v49 = vld [vmem:[%s1977_s3 + $0x10] sm:$0xff]  ;;  %v274_v50 = vld [vmem:[%s1977_s3 + $0x18] sm:$0xff]  ;;  %v349_v7 = vshrl.u32 %v348_v5, 7 }
   0x9   :  { %1475 = vmatprep.subr.bf16.mxu1 %v1612_v3  ;;  %v1485_v47 = vpack.c.bf16 %v272_v46, %v271_v45  ;;  %v1488_v52 = vpack.c.bf16 %v274_v50, %v273_v49  ;;  %v267_v53 = vld [vmem:[%s1976_s2] sm:$0xff]  ;;  %v268_v54 = vld [vmem:[%s1976_s2 + $0x8] sm:$0xff]  ;;  %v269_v56 = vld [vmem:[%s1976_s2 + $0x10] sm:$0xff] }
   0xa   :  { %v1491_v55 = vpack.c.bf16 %v268_v54, %v267_v53  ;;  %v270_v57 = vld [vmem:[%s1976_s2 + $0x18] sm:$0xff]  ;;  %v487_v61 = vld [vmem:[%s1979_s5] sm:$0xff]  ;;  %v697_v63 = vld [vmem:[%s1980_s6 + $0x8] sm:$0xff] }
   0xb   :  { %1287 = vmatmul.mubr.msk.f32.vlgmr.msra.gmra.mrb[0].mxu0 %vm50_vm1, %v39_v8  ;;  %1299 = vmatmul.mubr.msk.f32.vlgmr.msra.gmra.mrb[0].mxu1 %vm50_vm1, %v43_v9  ;;  %v1494_v60 = vpack.c.bf16 %v270_v57, %v269_v56  ;;  %v696_v62 = vld [vmem:[%s1980_s6] sm:$0xff]  ;;  %v698_v0 = vld [vmem:[%s1980_s6 + $0x10] sm:$0xff]  ;;  %v699_v2 = vld [vmem:[%s1980_s6 + $0x18] sm:$0xff] }
   0xc   :  { %1289 = vmatprep.mubr.msk.f32.mxu0 %vm1613_vm0, %v1614_v6  ;;  %1301 = vmatprep.mubr.msk.f32.mxu1 %vm1613_vm0, %v1614_v6  ;;  %v1508_v1 = vpack.c.bf16 %v697_v63, %v696_v62  ;;  %v1512_v4 = vpack.c.bf16 %v699_v2, %v698_v0  ;;  %v489_v45 = vld [vmem:[%s1979_s5 + $0x10] sm:$0xff]  ;;  %v490_v46 = vld [vmem:[%s1979_s5 + $0x18] sm:$0xff]  ;;  %v500_v56 = vld [vmem:[%s1979_s5 + $0x68] sm:$0xff] }
   0xd   :  { %v493_v49 = vld [vmem:[%s1979_s5 + $0x30] sm:$0xff]  ;;  %v494_v50 = vld [vmem:[%s1979_s5 + $0x38] sm:$0xff]  ;;  %vm1904_vm12 = vmpackc.low %vm50_vm1, %vm50_vm1 }
   0xe   :  { %v497_v53 = vld [vmem:[%s1979_s5 + $0x50] sm:$0xff]  ;;  %v498_v54 = vld [vmem:[%s1979_s5 + $0x58] sm:$0xff] }
   0xf   :  { %1290 = vmatmul.mubr.msk.f32.gmra.mrb[2].mxu0 %vm50_vm1, %v40_v10  ;;  %1302 = vmatmul.mubr.msk.f32.gmra.mrb[2].mxu1 %vm50_vm1, %v44_v11  ;;  %v350_v10 = vsub.s32 0, %v349_v7  ;;  %v501_v57 = vld [vmem:[%s1979_s5 + $0x70] sm:$0xff] }
  0x10   :  { %1292 = vmatprep.mubr.msk.f32.mxu0 %vm1613_vm0, %v1614_v6  ;;  %1304 = vmatprep.mubr.msk.f32.mxu1 %vm1613_vm0, %v1614_v6 }
  0x13   :  { %1293 = vmatmul.mubr.msk.f32.gmra.mrb[4].mxu0 %vm50_vm1, %v41_v12  ;;  %1305 = vmatmul.mubr.msk.f32.gmra.mrb[4].mxu1 %vm50_vm1, %v45_v13 }
  0x14   :  { %1295 = vmatprep.mubr.msk.f32.mxu0 %vm1613_vm0, %v1614_v6  ;;  %1321 = vmatprep.mubr.msk.f32.mxu1 %vm1613_vm0, %v1614_v6 }
  0x17   :  { %1296 = vmatmul.mubr.msk.f32.gmra.mrb[6].mxu0 %vm50_vm1, %v42_v14 }
  0x18   :  { %1378 = vmatprep.mubr.msk.f32.mxu0 %vm193_vm9, %v487_v61 }
  0xde   :  { %v138_v15 = vpop.f32.mrb[0].mxu0  ;;  %v158_v16 = vpop.f32.mrb[0].mxu1 }
  0xdf   :  { %v1288_v17 = vpop.f32.mrb[1].mxu0  ;;  %v1300_v18 = vpop.f32.mrb[1].mxu1  ;;  %v179_v19 = vmul.f32 0.01, %v138_v15  ;;  %vm172_vm2 = vcmp.ge.f32.partialorder %v138_v15, 0.0  ;;  %vm176_vm6 = vcmp.ge.f32.partialorder %v158_v16, 0.0 }
  0xe0   :  { %v183_v33 = vmul.f32 0.01, %v158_v16 }
  0xe1   :  { %v186_v25 = vsel %vm172_vm2, %v138_v15, %v179_v19  ;;  %v1132_v15 = vld [vmem:[%s1978_s4] ss:$0 sm:$0xff] }
  0xe2   :  { %v143_v20 = vpop.f32.mrb[2].mxu0  ;;  %v163_v21 = vpop.f32.mrb[2].mxu1  ;;  %v190_v41 = vsel %vm176_vm6, %v158_v16, %v183_v33 }
  0xe3   :  { %vm173_vm3 = vcmp.ge.f32.partialorder %v143_v20, 0.0  ;;  %v180_v22 = vmul.f32 0.01, %v143_v20  ;;  %v1291_v23 = vpop.f32.mrb[3].mxu0  ;;  %v1303_v24 = vpop.f32.mrb[3].mxu1  ;;  %vm177_vm7 = vcmp.ge.f32.partialorder %v163_v21, 0.0 }
  0xe4   :  { %v184_v35 = vmul.f32 0.01, %v163_v21 }
  0xe5   :  { %v187_v26 = vsel %vm173_vm3, %v143_v20, %v180_v22 }
  0xe6   :  { %v1476_v27 = vpack.c.bf16 %v187_v26, %v186_v25  ;;  %v148_v28 = vpop.f32.mrb[4].mxu0  ;;  %v168_v29 = vpop.f32.mrb[4].mxu1  ;;  %v191_v42 = vsel %vm177_vm7, %v163_v21, %v184_v35 }
  0xe7   :  { %v1294_v30 = vpop.f32.mrb[5].mxu0  ;;  %v1306_v31 = vpop.f32.mrb[5].mxu1  ;;  %v181_v32 = vmul.f32 0.01, %v148_v28  ;;  %vm174_vm4 = vcmp.ge.f32.partialorder %v148_v28, 0.0  ;;  %v1482_v43 = vpack.c.bf16 %v191_v42, %v190_v41  ;;  %vm178_vm8 = vcmp.ge.f32.partialorder %v168_v29, 0.0 }
  0xe8   :  { %1477 = vmatpush3.bf16.msra.mxu1 %v1476_v27  ;;  %v185_v44 = vmul.f32 0.01, %v168_v29 }
  0xe9   :  { %1478 = vmatprep.subr.bf16.mxu1 %v1612_v3  ;;  %v188_v38 = vsel %vm174_vm4, %v148_v28, %v181_v32 }
  0xea   :  { %v153_v34 = vpop.f32.mrb[6].mxu0  ;;  %v192_v48 = vsel %vm178_vm8, %v168_v29, %v185_v44  ;;  %v488_v44 = vld [vmem:[%s1979_s5 + $0x8] sm:$0xff] }
  0xeb   :  { %vm175_vm5 = vcmp.ge.f32.partialorder %v153_v34, 0.0  ;;  %v182_v36 = vmul.f32 0.01, %v153_v34  ;;  %v1297_v37 = vpop.f32.mrb[7].mxu0 }
  0xed   :  { %v189_v39 = vsel %vm175_vm5, %v153_v34, %v182_v36 }
  0xee   :  { %v1479_v40 = vpack.c.bf16 %v189_v39, %v188_v38 }
  0xf0   :  { %1480 = vmatpush3.bf16.msra.mxu1 %v1479_v40 }
  0xf1   :  { %1481 = vmatprep.subr.bf16.mxu1 %v1612_v3 }
  0xf4   :  { %1483 = vmatpush3.bf16.msra.mxu1 %v1482_v43 }
  0xf5   :  { %1319 = vmatprep.subr.mxu1 %v1614_v6 }
  0xf8   :  { %1320 = vmatpush3.msra.mxu1 %v192_v48 }
  0xf9   :  { %1322 = vmatmul.mubr.msk.f32.vlgmr.msra.gmra.mrb[6].mxu1 %vm193_vm9, %v1615_v51  ;;  %1484 = vmatprep.subr.bf16.mxu1 %v1612_v3  ;;  %v495_v51 = vld [vmem:[%s1979_s5 + $0x40] sm:$0xff] }
  0xfa   :  { %1486 = vmatpush3.bf16.msra.mxu1 %v1485_v47  ;;  %1332 = vmatprep.mubr.msk.f32.mxu1 %vm1613_vm0, %v1614_v6  ;;  %v491_v47 = vld [vmem:[%s1979_s5 + $0x20] sm:$0xff] }
  0xfb   :  { %1487 = vmatprep.subr.bf16.mxu1 %v1612_v3 }
  0xfe   :  { %1489 = vmatpush3.bf16.msra.mxu1 %v1488_v52  ;;  %v496_v52 = vld [vmem:[%s1979_s5 + $0x48] sm:$0xff] }
  0xff   :  { %1490 = vmatprep.subr.bf16.mxu1 %v1612_v3 }
 0x1cc   :  { %v263_v58 = vpop.f32.mrb[6].mxu1 }
 0x1cd   :  { %v1323_v59 = vpop.f32.mrb[7].mxu1  ;;  %1333 = vmatmul.mubr.msk.f32.vlgmr.msra.gmra.mrb[8].mxu1 %vm50_vm1, %v263_v58  ;;  %v502_v58 = vld [vmem:[%s1979_s5 + $0x78] sm:$0xff] }
 0x1ce   :  { %1492 = vmatpush3.bf16.msra.mxu1 %v1491_v55  ;;  %1343 = vmatprep.mubr.msk.f32.mxu1 %vm1613_vm0, %v1614_v6  ;;  %v499_v55 = vld [vmem:[%s1979_s5 + $0x60] sm:$0xff] }
 0x1cf   :  { %1493 = vmatprep.subr.bf16.mxu1 %v1612_v3 }
 0x1d2   :  { %1495 = vmatpush3.bf16.msra.mxu1 %v1494_v60 }
 0x1d3   :  { %1509 = vmatprep.subr.bf16.mxu1 %v1508_v1 }
 0x1d5   :  { %1344 = vmatmul.mubr.msk.f32.vlgmr.msra.gmra.mrb[10].mxu1 %vm50_vm1, %v186_v25 }
 0x1d6   :  { %1346 = vmatprep.mubr.msk.f32.mxu1 %vm1613_vm0, %v1614_v6  ;;  %1511 = vmatpush3.bf16.msra.mxu1 %v1508_v1 }
 0x1d7   :  { %1513 = vmatprep.subr.bf16.mxu1 %v1512_v4 }
 0x1d9   :  { %1347 = vmatmul.mubr.msk.f32.gmra.mrb[12].mxu1 %vm50_vm1, %v187_v26 }
 0x1da   :  { %1349 = vmatprep.mubr.msk.f32.mxu1 %vm1613_vm0, %v1614_v6  ;;  %1515 = vmatpush3.bf16.msra.mxu1 %v1512_v4 }
 0x1dd   :  { %1350 = vmatmul.mubr.msk.f32.gmra.mrb[14].mxu1 %vm50_vm1, %v188_v38 }
 0x1de   :  { %1352 = vmatprep.mubr.msk.f32.mxu1 %vm1613_vm0, %v1614_v6 }
 0x1e1   :  { %1353 = vmatmul.mubr.msk.f32.gmra.mrb[16].mxu1 %vm50_vm1, %v189_v39 }
 0x1e2   :  { %1355 = vmatprep.mubr.msk.f32.mxu1 %vm1613_vm0, %v1614_v6 }
 0x1e5   :  { %1356 = vmatmul.mubr.msk.f32.gmra.mrb[18].mxu1 %vm50_vm1, %v190_v41 }
 0x1e6   :  { %1358 = vmatprep.mubr.msk.f32.mxu1 %vm1613_vm0, %v1614_v6 }
 0x1e9   :  { %1359 = vmatmul.mubr.msk.f32.gmra.mrb[20].mxu1 %vm50_vm1, %v191_v42 }
 0x1ea   :  { %1361 = vmatprep.mubr.msk.f32.mxu1 %vm1613_vm0, %v1614_v6 }
 0x1ed   :  { %1362 = vmatmul.mubr.msk.f32.gmra.mrb[22].mxu1 %vm50_vm1, %v192_v48  ;;  %v492_v48 = vld [vmem:[%s1979_s5 + $0x28] sm:$0xff] }
 0x2a0   :  { %v344_v8 = vpop.f32.mrb[8].mxu1 }
 0x2a1   :  { %v1334_v9 = vpop.f32.mrb[9].mxu1  ;;  %v351_v11 = vrot.slane %v344_v8, %v350_v10 }
 0x2a8   :  { %v439_v12 = vpop.f32.mrb[10].mxu1 }
 0x2a9   :  { %v440_v13 = vadd.f32 %v439_v12, %v351_v11  ;;  %v1345_v14 = vpop.f32.mrb[11].mxu1  ;;  %v1896_v12 = vld [vmem:[%s1981_s7] ss:$0 sm:$0xff] }
 0x2ab   :  { %v480_v19 = vadd.f32 %v1132_v15, %v440_v13 }
 0x2ac   :  { %v444_v16 = vpop.f32.mrb[12].mxu1 }
 0x2ad   :  { %v445_v17 = vadd.f32 %v444_v16, %v351_v11  ;;  %v1348_v18 = vpop.f32.mrb[13].mxu1 }
 0x2af   :  { %v481_v20 = vadd.f32 %v1132_v15, %v445_v17 }
 0x2b0   :  { %v449_v21 = vpop.f32.mrb[14].mxu1 }
 0x2b1   :  { %v450_v22 = vadd.f32 %v449_v21, %v351_v11  ;;  %v1351_v23 = vpop.f32.mrb[15].mxu1  ;;  %v1496_v24 = vpack.c.bf16 %v481_v20, %v480_v19 }
 0x2b3   :  { %1497 = vmatprep.subr.bf16.mxu0 %v1496_v24  ;;  %v482_v28 = vadd.f32 %v1132_v15, %v450_v22 }
 0x2b4   :  { %v454_v25 = vpop.f32.mrb[16].mxu1  ;;  %1499 = vmatpush3.bf16.msra.mxu0 %v1496_v24 }
 0x2b5   :  { %v455_v26 = vadd.f32 %v454_v25, %v351_v11  ;;  %v1354_v27 = vpop.f32.mrb[17].mxu1 }
 0x2b7   :  { %v483_v29 = vadd.f32 %v1132_v15, %v455_v26 }
 0x2b8   :  { %v459_v30 = vpop.f32.mrb[18].mxu1 }
 0x2b9   :  { %v460_v31 = vadd.f32 %v459_v30, %v351_v11  ;;  %v1357_v32 = vpop.f32.mrb[19].mxu1  ;;  %v1500_v33 = vpack.c.bf16 %v483_v29, %v482_v28 }
 0x2bb   :  { %1501 = vmatprep.subr.bf16.mxu0 %v1500_v33  ;;  %v484_v37 = vadd.f32 %v1132_v15, %v460_v31 }
 0x2bc   :  { %v464_v34 = vpop.f32.mrb[20].mxu1  ;;  %1503 = vmatpush3.bf16.msra.mxu0 %v1500_v33 }
 0x2bd   :  { %v465_v35 = vadd.f32 %v464_v34, %v351_v11  ;;  %v1360_v36 = vpop.f32.mrb[21].mxu1 }
 0x2bf   :  { %v485_v38 = vadd.f32 %v1132_v15, %v465_v35 }
 0x2c0   :  { %v469_v39 = vpop.f32.mrb[22].mxu1 }
 0x2c1   :  { %v470_v40 = vadd.f32 %v469_v39, %v351_v11  ;;  %v1363_v41 = vpop.f32.mrb[23].mxu1  ;;  %v1504_v42 = vpack.c.bf16 %v485_v38, %v484_v37 }
 0x2c3   :  { %v486_v43 = vadd.f32 %v1132_v15, %v470_v40  ;;  %1505 = vmatprep.subr.bf16.mxu0 %v1504_v42 }
 0x2c4   :  { %1507 = vmatpush3.bf16.msra.mxu0 %v1504_v42 }
 0x2c5   :  { %1376 = vmatprep.subr.mxu0 %v486_v43 }
 0x2c8   :  { %1377 = vmatpush3.msra.mxu0 %v486_v43 }
 0x2c9   :  { %1379 = vmatmul.mubr.msk.f32.vlgmr.msra.gmra.mrb[8].mxu0 %vm193_vm9, %v488_v44  ;;  %1516 = vmatprep.subr.bf16.mxu0 %v1612_v3 }
 0x2ca   :  { %1381 = vmatprep.mubr.msk.f32.mxu0 %vm193_vm9, %v489_v45 }
 0x2cd   :  { %1382 = vmatmul.mubr.msk.f32.gmra.mrb[10].mxu0 %vm193_vm9, %v490_v46 }
 0x2ce   :  { %1384 = vmatprep.mubr.msk.f32.mxu0 %vm193_vm9, %v491_v47 }
 0x2d1   :  { %1385 = vmatmul.mubr.msk.f32.gmra.mrb[12].mxu0 %vm193_vm9, %v492_v48 }
 0x2d2   :  { %1387 = vmatprep.mubr.msk.f32.mxu0 %vm193_vm9, %v493_v49 }
 0x2d5   :  { %1388 = vmatmul.mubr.msk.f32.gmra.mrb[14].mxu0 %vm193_vm9, %v494_v50 }
 0x2d6   :  { %1390 = vmatprep.mubr.msk.f32.mxu0 %vm193_vm9, %v495_v51 }
 0x2d9   :  { %1391 = vmatmul.mubr.msk.f32.gmra.mrb[16].mxu0 %vm193_vm9, %v496_v52 }
 0x2da   :  { %1393 = vmatprep.mubr.msk.f32.mxu0 %vm193_vm9, %v497_v53 }
 0x2dd   :  { %1394 = vmatmul.mubr.msk.f32.gmra.mrb[18].mxu0 %vm193_vm9, %v498_v54 }
 0x2de   :  { %1396 = vmatprep.mubr.msk.f32.mxu0 %vm193_vm9, %v499_v55 }
 0x2e1   :  { %1397 = vmatmul.mubr.msk.f32.gmra.mrb[20].mxu0 %vm193_vm9, %v500_v56 }
 0x2e2   :  { %1399 = vmatprep.mubr.msk.f32.mxu0 %vm193_vm9, %v501_v57 }
 0x2e5   :  { %1400 = vmatmul.mubr.msk.f32.gmra.mrb[22].mxu0 %vm193_vm9, %v502_v58 }
 0x2e6   :  { %1466 = vmatprep.mubr.msk.f32.mxu0 %vm1613_vm0, %v1614_v6 }
 0x39c   :  { %v1380_v59 = vpop.f32.mrb[8].mxu0 }
 0x39d   :  { %v617_v60 = vpop.f32.mrb[9].mxu0 }
 0x39e   :  { %1410 = vmatprep.mubr.msk.f32.mxu1 %vm50_vm1, %v617_v60 }
 0x39f   :  { %1411 = vmatmul.mubr.msk.f32.vlgmr.msra.gmra.mrb[24].mxu1 %vm50_vm1, %v1380_v59 }
 0x3a0   :  { %v1383_v61 = vpop.f32.mrb[10].mxu0 }
 0x3a1   :  { %v627_v62 = vpop.f32.mrb[11].mxu0 }
 0x3a2   :  { %1413 = vmatprep.mubr.msk.f32.mxu1 %vm50_vm1, %v627_v62 }
 0x3a3   :  { %1414 = vmatmul.mubr.msk.f32.gmra.mrb[26].mxu1 %vm50_vm1, %v1383_v61 }
 0x3a4   :  { %v1386_v63 = vpop.f32.mrb[12].mxu0 }
 0x3a5   :  { %v637_v0 = vpop.f32.mrb[13].mxu0 }
 0x3a6   :  { %1416 = vmatprep.mubr.msk.f32.mxu1 %vm50_vm1, %v637_v0 }
 0x3a7   :  { %1417 = vmatmul.mubr.msk.f32.gmra.mrb[28].mxu1 %vm50_vm1, %v1386_v63 }
 0x3a8   :  { %v1389_v1 = vpop.f32.mrb[14].mxu0 }
 0x3a9   :  { %v647_v6 = vpop.f32.mrb[15].mxu0 }
 0x3aa   :  { %1419 = vmatprep.mubr.msk.f32.mxu1 %vm50_vm1, %v647_v6 }
 0x3ab   :  { %1420 = vmatmul.mubr.msk.f32.gmra.mrb[30].mxu1 %vm50_vm1, %v1389_v1 }
 0x3ac   :  { %v1392_v2 = vpop.f32.mrb[16].mxu0 }
 0x3ad   :  { %v657_v4 = vpop.f32.mrb[17].mxu0 }
 0x3ae   :  { %1422 = vmatprep.mubr.msk.f32.mxu1 %vm50_vm1, %v657_v4 }
 0x3af   :  { %1423 = vmatmul.mubr.msk.f32.gmra.mrb[32].mxu1 %vm50_vm1, %v1392_v2 }
 0x3b0   :  { %v1395_v5 = vpop.f32.mrb[18].mxu0 }
 0x3b1   :  { %v667_v7 = vpop.f32.mrb[19].mxu0 }
 0x3b2   :  { %1425 = vmatprep.mubr.msk.f32.mxu1 %vm50_vm1, %v667_v7 }
 0x3b3   :  { %1426 = vmatmul.mubr.msk.f32.gmra.mrb[34].mxu1 %vm50_vm1, %v1395_v5 }
 0x3b4   :  { %v1398_v8 = vpop.f32.mrb[20].mxu0 }
 0x3b5   :  { %v677_v9 = vpop.f32.mrb[21].mxu0 }
 0x3b6   :  { %1428 = vmatprep.mubr.msk.f32.mxu1 %vm50_vm1, %v677_v9 }
 0x3b7   :  { %1429 = vmatmul.mubr.msk.f32.gmra.mrb[36].mxu1 %vm50_vm1, %v1398_v8 }
 0x3b8   :  { %v1401_v10 = vpop.f32.mrb[22].mxu0 }
 0x3b9   :  { %v687_v11 = vpop.f32.mrb[23].mxu0 }
 0x3ba   :  { %1431 = vmatprep.mubr.msk.f32.mxu1 %vm50_vm1, %v687_v11 }
 0x3bb   :  { %1432 = vmatmul.mubr.msk.f32.gmra.mrb[38].mxu1 %vm50_vm1, %v1401_v10 }
 0x472   :  { %v1412_v13 = vpop.f32.mrb[24].mxu1 }
 0x473   :  { %v827_v14 = vadd.f32 %v1412_v13, %v1896_v12  ;;  %v821_v15 = vpop.f32.mrb[25].mxu1 }
 0x474   :  { %v822_v16 = vadd.f32 %v1896_v12, %v821_v15 }
 0x475   :  { %vm901_vm10 = vcmp.ge.f32.partialorder %v827_v14, 0.0  ;;  %v917_v17 = vmul.f32 0.01, %v827_v14 }
 0x476   :  { %vm900_vm11 = vcmp.ge.f32.partialorder %v822_v16, 0.0  ;;  %v916_v18 = vmul.f32 0.01, %v822_v16  ;;  %v1415_v19 = vpop.f32.mrb[26].mxu1 }
 0x477   :  { %v933_v20 = vsel %vm901_vm10, %v827_v14, %v917_v17  ;;  %v837_v21 = vadd.f32 %v1415_v19, %v1896_v12  ;;  %v831_v22 = vpop.f32.mrb[27].mxu1 }
 0x478   :  { %v932_v23 = vsel %vm900_vm11, %v822_v16, %v916_v18  ;;  %v832_v24 = vadd.f32 %v1896_v12, %v831_v22 }
 0x479   :  { %v1517_v26 = vpack.c.bf16 %v933_v20, %v932_v23  ;;  %vm903_vm13 = vcmp.ge.f32.partialorder %v837_v21, 0.0  ;;  %v919_v27 = vmul.f32 0.01, %v837_v21 }
 0x47a   :  { %vm902_vm14 = vcmp.ge.f32.partialorder %v832_v24, 0.0  ;;  %v918_v28 = vmul.f32 0.01, %v832_v24  ;;  %v1418_v29 = vpop.f32.mrb[28].mxu1 }
 0x47b   :  { %v935_v30 = vsel %vm903_vm13, %v837_v21, %v919_v27  ;;  %1519 = vmatpush3.bf16.xpose.msk.msra.mxu0 %vm1904_vm12, %v1517_v26  ;;  %v847_v31 = vadd.f32 %v1418_v29, %v1896_v12  ;;  %v841_v32 = vpop.f32.mrb[29].mxu1  ;;  %vm1074_vm13 = vcmask 1040384  }
 0x47c   :  { %v934_v33 = vsel %vm902_vm14, %v832_v24, %v918_v28  ;;  %v842_v34 = vadd.f32 %v1896_v12, %v841_v32  ;;  %1520 = vmatprep.subr.bf16.mxu0 %v1612_v3  ;;  %v1072_v28 = vld [vmem:[%s1983_s9] sm:$0x1] }
 0x47d   :  { %v1521_v35 = vpack.c.bf16 %v935_v30, %v934_v33  ;;  %vm905_vm15 = vcmp.ge.f32.partialorder %v847_v31, 0.0  ;;  %v921_v36 = vmul.f32 0.01, %v847_v31 }
 0x47e   :  { %vm904_vm0 = vcmp.ge.f32.partialorder %v842_v34, 0.0  ;;  %v920_v37 = vmul.f32 0.01, %v842_v34  ;;  %v1421_v38 = vpop.f32.mrb[30].mxu1 }
 0x47f   :  { %v937_v39 = vsel %vm905_vm15, %v847_v31, %v921_v36  ;;  %v857_v40 = vadd.f32 %v1421_v38, %v1896_v12  ;;  %v851_v41 = vpop.f32.mrb[31].mxu1 }
 0x480   :  { %v936_v42 = vsel %vm904_vm0, %v842_v34, %v920_v37  ;;  %v852_v43 = vadd.f32 %v1896_v12, %v851_v41 }
 0x481   :  { %v1525_v44 = vpack.c.bf16 %v937_v39, %v936_v42  ;;  %vm907_vm2 = vcmp.ge.f32.partialorder %v857_v40, 0.0  ;;  %v923_v45 = vmul.f32 0.01, %v857_v40 }
 0x482   :  { %vm906_vm3 = vcmp.ge.f32.partialorder %v852_v43, 0.0  ;;  %v922_v46 = vmul.f32 0.01, %v852_v43  ;;  %v1424_v47 = vpop.f32.mrb[32].mxu1 }
 0x483   :  { %1523 = vmatpush3.bf16.xpose.msk.msra.mxu0 %vm1904_vm12, %v1521_v35  ;;  %v939_v48 = vsel %vm907_vm2, %v857_v40, %v923_v45  ;;  %v867_v49 = vadd.f32 %v1424_v47, %v1896_v12  ;;  %v861_v50 = vpop.f32.mrb[33].mxu1 }
 0x484   :  { %v938_v51 = vsel %vm906_vm3, %v852_v43, %v922_v46  ;;  %1524 = vmatprep.subr.bf16.mxu0 %v1612_v3  ;;  %v862_v52 = vadd.f32 %v1896_v12, %v861_v50 }
 0x485   :  { %v1529_v53 = vpack.c.bf16 %v939_v48, %v938_v51  ;;  %vm909_vm4 = vcmp.ge.f32.partialorder %v867_v49, 0.0  ;;  %v925_v54 = vmul.f32 0.01, %v867_v49 }
 0x486   :  { %vm908_vm5 = vcmp.ge.f32.partialorder %v862_v52, 0.0  ;;  %v924_v55 = vmul.f32 0.01, %v862_v52  ;;  %v1427_v56 = vpop.f32.mrb[34].mxu1 }
 0x487   :  { %v941_v57 = vsel %vm909_vm4, %v867_v49, %v925_v54  ;;  %v877_v58 = vadd.f32 %v1427_v56, %v1896_v12  ;;  %v871_v59 = vpop.f32.mrb[35].mxu1 }
 0x488   :  { %v940_v60 = vsel %vm908_vm5, %v862_v52, %v924_v55  ;;  %v872_v61 = vadd.f32 %v1896_v12, %v871_v59 }
 0x489   :  { %v1533_v62 = vpack.c.bf16 %v941_v57, %v940_v60  ;;  %vm911_vm6 = vcmp.ge.f32.partialorder %v877_v58, 0.0  ;;  %v927_v63 = vmul.f32 0.01, %v877_v58 }
 0x48a   :  { %vm910_vm7 = vcmp.ge.f32.partialorder %v872_v61, 0.0  ;;  %v926_v0 = vmul.f32 0.01, %v872_v61  ;;  %v1430_v1 = vpop.f32.mrb[36].mxu1 }
 0x48b   :  { %1527 = vmatpush3.bf16.xpose.msk.msra.mxu0 %vm1904_vm12, %v1525_v44  ;;  %v943_v6 = vsel %vm911_vm6, %v877_v58, %v927_v63  ;;  %v887_v2 = vadd.f32 %v1430_v1, %v1896_v12  ;;  %v881_v4 = vpop.f32.mrb[37].mxu1 }
 0x48c   :  { %1528 = vmatprep.subr.bf16.mxu0 %v1612_v3  ;;  %v942_v5 = vsel %vm910_vm7, %v872_v61, %v926_v0  ;;  %v882_v7 = vadd.f32 %v1896_v12, %v881_v4 }
 0x48d   :  { %v1537_v8 = vpack.c.bf16 %v943_v6, %v942_v5  ;;  %vm913_vm8 = vcmp.ge.f32.partialorder %v887_v2, 0.0  ;;  %v929_v9 = vmul.f32 0.01, %v887_v2 }
 0x48e   :  { %vm912_vm9 = vcmp.ge.f32.partialorder %v882_v7, 0.0  ;;  %v928_v10 = vmul.f32 0.01, %v882_v7  ;;  %v1433_v11 = vpop.f32.mrb[38].mxu1 }
 0x48f   :  { %v945_v13 = vsel %vm913_vm8, %v887_v2, %v929_v9  ;;  %v897_v14 = vadd.f32 %v1433_v11, %v1896_v12  ;;  %v891_v15 = vpop.f32.mrb[39].mxu1 }
 0x490   :  { %v944_v16 = vsel %vm912_vm9, %v882_v7, %v928_v10  ;;  %v892_v17 = vadd.f32 %v1896_v12, %v891_v15  ;;  %v948_v12 = vld [vmem:[%s1982_s8] sm:$0x1]  ;;  %s1616_s8 = smov [#allocation4]  }
 0x491   :  { %v1541_v18 = vpack.c.bf16 %v945_v13, %v944_v16  ;;  %vm915_vm10 = vcmp.ge.f32.partialorder %v897_v14, 0.0  ;;  %v931_v19 = vmul.f32 0.01, %v897_v14  ;;  %s1104_s28 = sshll.u32 %s1616_s8, 4  ;;  %s1105_s28 = int_to_ptr.vmem [resolvable:$true] %s1104_s28 }
 0x492   :  { %vm914_vm11 = vcmp.ge.f32.partialorder %v892_v17, 0.0  ;;  %v930_v20 = vmul.f32 0.01, %v892_v17  ;;  %s1564_s29 = scalar_lea.vmem %s1105_s28, 16  ;;  %s1568_s30 = scalar_lea.vmem %s1105_s28, 32 }
 0x493   :  { %1531 = vmatpush3.bf16.xpose.msk.msra.mxu0 %vm1904_vm12, %v1529_v53  ;;  %v947_v21 = vsel %vm915_vm10, %v897_v14, %v931_v19  ;;  %p1565_p0 = scmp.ne.s32.totalorder %s1105_s28, %s1564_s29  ;;  %p1569_p1 = scmp.lt.s32.totalorder %s1105_s28, %s1105_s28 }
 0x494   :  { %1532 = vmatprep.subr.bf16.mxu0 %v1612_v3  ;;  %v946_v22 = vsel %vm914_vm11, %v892_v17, %v930_v20  ;;  %p1570_p2 = scmp.lt.s32.totalorder %s1568_s30, %s1564_s29 }
 0x495   :  { %v1545_v23 = vpack.c.bf16 %v947_v21, %v946_v22 }
 0x496   :  { %p1571_p3 = por %p1570_p2, %p1569_p1 }
 0x498   :  { %p1572_p4 = pnand %p1571_p3, %p1565_p0 }
 0x49b   :  { %1535 = vmatpush3.bf16.xpose.msk.msra.mxu0 %vm1904_vm12, %v1533_v62 }
 0x49c   :  { %1536 = vmatprep.subr.bf16.mxu0 %v1612_v3 }
 0x4a3   :  { %1539 = vmatpush3.bf16.xpose.msk.msra.mxu0 %vm1904_vm12, %v1537_v8 }
 0x4a4   :  { %1540 = vmatprep.subr.bf16.mxu0 %v1612_v3 }
 0x4ab   :  { %1543 = vmatpush3.bf16.xpose.msk.msra.mxu0 %vm1904_vm12, %v1541_v18 }
 0x4ac   :  { %1544 = vmatprep.subr.bf16.mxu0 %v1612_v3 }
 0x4b3   :  { %1547 = vmatpush3.bf16.xpose.msk.msra.mxu0 %vm1904_vm12, %v1545_v23 }
 0x4ba   :  { %1467 = vmatmul.mubr.msk.f32.vlgmr.msra.gmra.mrb[24].mxu0 %vm50_vm1, %v948_v12 }
 0x58d   :  { %v1066_v24 = vpop.f32.mrb[24].mxu0 }
 0x58e   :  { %1558 = vtanh.f32 %v1066_v24  ;;  %1087 = vst [vmem:[#allocation4] sm:$0x1] %v1066_v24  ;;  %v1468_v26 = vpop.f32.mrb[25].mxu0 }
 0x598   :  { %v1559_v27 = vpop.eup %1558 }
 0x599   :  { %v1071_v29 = vmul.f32 10.0, %v1559_v27 }
 0x59b   :  { %v1073_v3 = vadd.f32 %v1072_v28, %v1071_v29 }
 0x59d   :  { %v1075_v25 = vsel %vm1074_vm13, %v1073_v3, -inf }
 0x59e   :  { %1076 = vmax.xlane.f32.xlu0 %v1075_v25 }
 0x62b   :  { %v1077_v30 = vpop.xlane.xlu0 %1076 }
 0x62c   :  { %v1078_v31 = vsub.f32 %v1073_v3, %v1077_v30 }
 0x62e   :  { %v1079_v32 = vmul.f32 1.442695, %v1078_v31 }
 0x630   :  { %1560 = vpow2.f32 %v1079_v32 }
 0x63a   :  { %v1561_v33 = vpop.eup %1560 }
 0x63b   :  { %v1081_v34 = vsel %vm1074_vm13, %v1561_v33, 0.0 }
 0x63c   :  { %1082 = vadd.xlane.f32.xlu0 %v1081_v34 }
 0x63d   :  { %1575 = shalt.err (!%p1572_p4)
}
 0x63e   :  { %s1576_s2 = scalar_lea.hbm %s1985_s11, 16 }
 0x63f   :  { %p1577_p5 = scmp.ne.s32.totalorder %s1985_s11, %s1576_s2  ;;  %p1580_p6 = scmp.lt.u32.totalorder %s1576_s2, %s1985_s11 }
 0x641   :  { %p1582_p7 = pnand %p1580_p6, %p1577_p5 }
 0x643   :  { %1585 = shalt.err (!%p1582_p7)
}
 0x644   :  { %1107 = dma.vmem_to_hbm [thread:$0]  %s1105_s28, 16, %s1985_s11, [#allocation5]  }
 0x645   :  { %s1617_s0 = smov [#allocation2]  }
 0x646   :  { %s1094_s19 = sshll.u32 %s1617_s0, 4  ;;  %s1095_s19 = int_to_ptr.vmem [resolvable:$true] %s1094_s19 }
 0x647   :  { %s1586_s20 = scalar_lea.vmem %s1095_s19, 16  ;;  %s1590_s21 = scalar_lea.vmem %s1095_s19, 32 }
 0x648   :  { %p1587_p8 = scmp.ne.s32.totalorder %s1095_s19, %s1586_s20  ;;  %p1591_p9 = scmp.lt.s32.totalorder %s1095_s19, %s1095_s19 }
 0x649   :  { %p1592_p10 = scmp.lt.s32.totalorder %s1590_s21, %s1586_s20 }
 0x64b   :  { %p1593_p11 = por %p1592_p10, %p1591_p9 }
 0x64d   :  { %p1594_p12 = pnand %p1593_p11, %p1587_p8 }
 0x6c9   :  { %v1083_v35 = vpop.xlane.xlu0 %1082 }
 0x6ca   :  { %1562 = vrcp.f32 %v1083_v35 }
 0x6d4   :  { %v1563_v36 = vpop.eup %1562 }
 0x6d5   :  { %v1085_v37 = vmul.f32 %v1563_v36, %v1561_v33 }
 0x6d7   :  { %1086 = vst [vmem:[#allocation2] sm:$0x1] %v1085_v37 }
 0x6d8   :  { %1597 = shalt.err (!%p1594_p12)
}
 0x6d9   :  { %s1598_s11 = scalar_lea.hbm %s1984_s10, 16 }
 0x6da   :  { %p1599_p13 = scmp.ne.s32.totalorder %s1984_s10, %s1598_s11  ;;  %p1602_p0 = scmp.lt.u32.totalorder %s1598_s11, %s1984_s10 }
 0x6dc   :  { %p1604_p1 = pnand %p1602_p0, %p1599_p13 }
 0x6de   :  { %1607 = shalt.err (!%p1604_p1)
}
 0x6df   :  { %1097 = dma.vmem_to_hbm [thread:$0]  %s1095_s19, 16, %s1984_s10, [#allocation3]  }
 0x6e0   :  { %1608 = dma.done.wait [#allocation3], 16  }
 0x6e1   :  { %1609 = vsyncadd [#allocation3], 4294967280 }
 0x6e2   :  { %1610 = dma.done.wait [#allocation5], 16  }
 0x6e3   :  { %1611 = vsyncadd [#allocation5], 4294967280 }
 0x6e4   :  { %1114 = vsyncpa [#allocation3], 1 }
 0x6e5   :  { %1115 = vsyncpa [#allocation5], 1 }

</bundles_post_ra>
